<compile_context>
chip_gen: v6e
topology: v6e:2x2x1
jax: 0.10.0
libtpu: 0.0.40
codegen_flags: <defaults>
</compile_context>

<pallas_src>
import functools

import jax
import jax.numpy as jnp
from jax.experimental import pallas as pl
from jax.experimental.pallas import tpu as pltpu


def _maxpool_kernel(x_ref, sel_ref, o_ref, *, ho, wi, precision):
    """Fused 3x3 / stride-2 max pool of a zero-padded image, folded layout.

    x_ref  : (rows, 2*wi)  one row per (channel, image-row-pair):
                           cols [0:wi]   = image row 2i,
                           cols [wi:2wi] = image row 2i+1 of the same channel.
    sel_ref: (wi, wo)      0/1 matrix with sel[2k, k] = 1 (lane stride-2 pick).
    o_ref  : (rows, wo)    pooled output, one row per (channel, output row).
    """
    xf = x_ref[...]
    rows, w2 = xf.shape
    dt = xf.dtype
    zero = jnp.zeros((), dt)

    # ---------- W direction: 3-wide window max with zero padding ----------
    # Neighbor copies via 1-lane shifts (static slice + concat with a zero
    # column); the seam between the two packed row halves is masked back to 0
    # (exactly the pad value), so no cross-row leakage.
    zcol = jnp.zeros((rows, 1), dt)
    lane = jax.lax.broadcasted_iota(jnp.int32, (1, w2), 1)
    left = jnp.concatenate([zcol, xf[:, : w2 - 1]], axis=1)       # left[j] = xf[j-1]
    left = jnp.where(lane == wi, zero, left)                      # A|B seam -> pad 0
    right = jnp.concatenate([xf[:, 1:], zcol], axis=1)            # right[j] = xf[j+1]
    right = jnp.where(lane == wi - 1, zero, right)                # A|B seam -> pad 0
    mw = jnp.maximum(xf, jnp.maximum(left, right))                # (rows, 2*wi)

    # ---------- H direction: max over image rows {2i-1, 2i, 2i+1} ----------
    a = mw[:, :wi]                    # W-window max of image row 2i
    b = mw[:, wi:]                    # W-window max of image row 2i+1
    zrow = jnp.zeros((1, wi), dt)
    b_prev = jnp.concatenate([zrow, b[:-1, :]], axis=0)           # image row 2i-1
    ridx = jax.lax.broadcasted_iota(jnp.int32, (rows, 1), 0)
    b_prev = jnp.where(ridx % ho == 0, zero, b_prev)              # top pad / channel seam
    m2 = jnp.maximum(a, jnp.maximum(b, b_prev))                   # 3x3 max at every even col

    # ---------- W stride-2 pick: one 0/1 selection matmul (exact) ----------
    # TODO(synk): replace with a lane-strided gather if/when lane-stride picks
    # lower cleanly; this single small matmul keeps the kernel HBM-bound.
    out = jnp.dot(m2, sel_ref[...], preferred_element_type=jnp.float32,
                  precision=precision)
    o_ref[...] = out.astype(o_ref.dtype)                          # one wide store / tile


def _pick_channel_tile(nc, rows_per_chan, lanes, itemsize):
    """Channels per grid step for the folded (nc*ho, 2W) layout.

    Largest divisor of nc whose input block fits a ~2 MiB VMEM budget and keeps
    the block's sublane count 8-aligned; prefer an even number of grid steps
    (both v7x TensorCores get work) when that costs at most a 2x smaller tile.
    Small inputs are NOT force-split into tiny tiles.
    """
    chan_bytes = rows_per_chan * lanes * itemsize
    budget = 2 * 1024 * 1024
    max_tc = max(1, budget // max(1, chan_bytes))
    valid = [t for t in range(1, nc + 1)
             if nc % t == 0 and t <= max_tc and (t * rows_per_chan) % 8 == 0]
    if not valid:
        return nc                          # single full-array block (always legal)
    best = max(valid)
    even = [t for t in valid if (nc // t) % 2 == 0]
    if even and 2 * max(even) >= best:
        return max(even)
    return best


def maxpool_forward(x):
    """Equivalent of Maxpool.forward: zero-pad by 1, MaxPool2d(3, 2). NCHW in/out."""
    n, c, h, w = x.shape
    ho = (h - 1) // 2 + 1
    wo = (w - 1) // 2 + 1
    nc = n * c

    # Make spatial dims even by appending at most one zero row/column; that
    # strip is exactly the zero padding the last pool window would see, so the
    # row-pair fold below stays exact for odd sizes too.
    hp, wp = h + (h % 2), w + (w % 2)
    if (hp, wp) != (h, w):
        x = jnp.pad(x, ((0, 0), (0, 0), (0, hp - h), (0, wp - w)))
    assert ho == hp // 2 and wo == wp // 2

    # Fold each pair of image rows onto the lane axis: (n,c,hp,wp)->(nc*ho, 2wp).
    # Contiguous reshape -> free; W stays on lanes, no transposes, no jnp.pad
    # of the interior, one HBM read of x and one HBM write of the result.
    x_f = x.reshape(nc * ho, 2 * wp)

    # 0/1 lane-downsample matrix, built once on the host (hoisted out of the
    # sequential grid loop) and kept VMEM-resident via a constant index_map.
    sel = (jax.lax.broadcasted_iota(jnp.int32, (wp, wo), 0)
           == 2 * jax.lax.broadcasted_iota(jnp.int32, (wp, wo), 1)).astype(x.dtype)

    tc = _pick_channel_tile(nc, ho, 2 * wp, x.dtype.itemsize)
    rows = tc * ho
    precision = (jax.lax.Precision.HIGHEST if x.dtype == jnp.float32
                 else jax.lax.Precision.DEFAULT)

    kernel = functools.partial(_maxpool_kernel, ho=ho, wi=wp, precision=precision)
    in_bytes = x_f.size * x_f.dtype.itemsize + sel.size * sel.dtype.itemsize
    out_bytes = nc * ho * wo * x.dtype.itemsize
    cost = pl.CostEstimate(flops=2 * nc * ho * wp * wo,   # the one selection matmul
                           transcendentals=0,
                           bytes_accessed=in_bytes + out_bytes)

    out2 = pl.pallas_call(
        kernel,
        out_shape=jax.ShapeDtypeStruct((nc * ho, wo), x.dtype),
        grid=(nc // tc,),
        in_specs=[pl.BlockSpec((rows, 2 * wp), lambda i: (i, 0)),
                  pl.BlockSpec((wp, wo), lambda i: (0, 0))],
        out_specs=pl.BlockSpec((rows, wo), lambda i: (i, 0)),
        compiler_params=pltpu.CompilerParams(
            dimension_semantics=("parallel",),
            vmem_limit_bytes=32 * 1024 * 1024),
        cost_estimate=cost,
    )(x_f, sel)
    # TODO(synk): optionally present the out block as (tc, ho*wo) when
    # ho*wo >= 128 for a fully lane-dense writeback (same contiguous bytes).
    return out2.reshape(n, c, ho, wo)


if __name__ == "__main__":
    key = jax.random.PRNGKey(0)
    x = jax.random.normal(key, (2, 4, 16, 16), dtype=jnp.float32)

    out = jax.jit(maxpool_forward)(x)
    out = jax.block_until_ready(out)

    # Reference: explicit zero pad then 3x3 / stride-2 max pool (== the module).
    xp = jnp.pad(x, ((0, 0), (0, 0), (1, 1), (1, 1)))
    ref = jax.lax.reduce_window(
        xp, -jnp.inf, jax.lax.max, (1, 1, 3, 3), (1, 1, 2, 2), "VALID"
    )
    assert out.shape == (2, 4, 8, 8), out.shape
    assert out.dtype == jnp.float32
    assert jnp.allclose(out, ref, rtol=1e-6, atol=1e-6), "mismatch vs reference max pool"
    print("KERNEL_OK")
</pallas_src>

<mosaic_0001>
module attributes {stable_mosaic.version = 11 : i64} {
  func.func @_maxpool_kernel(%arg0: i32, %arg1: memref<32x32xf32, #tpu.memory_space<vmem>>, %arg2: memref<16x8xf32, #tpu.memory_space<vmem>>, %arg3: memref<32x8xf32, #tpu.memory_space<vmem>>) attributes {dimension_semantics = [#tpu.dimension_semantics<parallel>], iteration_bounds = array<i64: 2>, scalar_prefetch = 0 : i64, scratch_operands = 0 : i64, tpu.core_type = #tpu.core_type<tc>, window_params = [{transform_indices = @transform_0, window_bounds = array<i64: 32, 32>}, {pipeline_mode = #tpu.pipeline_mode<synchronous>, transform_indices = @transform_1, window_bounds = array<i64: 16, 8>}, {transform_indices = @transform_2, window_bounds = array<i64: 32, 8>}]} {
    %c0 = arith.constant 0 : index
    %c0_0 = arith.constant 0 : index
    %0 = vector.load %arg1[%c0, %c0_0] : memref<32x32xf32, #tpu.memory_space<vmem>>, vector<32x32xf32>
    %cst = arith.constant 0.000000e+00 : f32
    %1 = vector.broadcast %cst : f32 to vector<32x1xf32>
    %2 = tpu.iota {dimensions = array<i32: 1>} : vector<1x32xi32>
    %3 = vector.extract_strided_slice %0 {offsets = [0, 0], sizes = [32, 31], strides = [1, 1]} : vector<32x32xf32> to vector<32x31xf32>
    %4 = tpu.concatenate %1, %3 in 1 : vector<32x1xf32>, vector<32x31xf32> -> vector<32x32xf32>
    %c16_i32 = arith.constant 16 : i32
    %5 = vector.broadcast %c16_i32 : i32 to vector<1x32xi32>
    %6 = arith.cmpi eq, %2, %5 : vector<1x32xi32>
    %cst_1 = arith.constant 0.000000e+00 : f32
    %7 = vector.shape_cast %6 : vector<1x32xi1> to vector<1x32xi1>
    %8 = vector.broadcast %7 : vector<1x32xi1> to vector<32x32xi1>
    %9 = vector.broadcast %cst_1 : f32 to vector<32x32xf32>
    %10 = arith.select %8, %9, %4 : vector<32x32xi1>, vector<32x32xf32>
    %11 = vector.extract_strided_slice %0 {offsets = [0, 1], sizes = [32, 31], strides = [1, 1]} : vector<32x32xf32> to vector<32x31xf32>
    %12 = tpu.concatenate %11, %1 in 1 : vector<32x31xf32>, vector<32x1xf32> -> vector<32x32xf32>
    %c15_i32 = arith.constant 15 : i32
    %13 = vector.broadcast %c15_i32 : i32 to vector<1x32xi32>
    %14 = arith.cmpi eq, %2, %13 : vector<1x32xi32>
    %cst_2 = arith.constant 0.000000e+00 : f32
    %15 = vector.shape_cast %14 : vector<1x32xi1> to vector<1x32xi1>
    %16 = vector.broadcast %15 : vector<1x32xi1> to vector<32x32xi1>
    %17 = vector.broadcast %cst_2 : f32 to vector<32x32xf32>
    %18 = arith.select %16, %17, %12 : vector<32x32xi1>, vector<32x32xf32>
    %19 = arith.maximumf %10, %18 : vector<32x32xf32>
    %20 = arith.maximumf %0, %19 : vector<32x32xf32>
    %21 = vector.extract_strided_slice %20 {offsets = [0, 0], sizes = [32, 16], strides = [1, 1]} : vector<32x32xf32> to vector<32x16xf32>
    %22 = vector.extract_strided_slice %20 {offsets = [0, 16], sizes = [32, 16], strides = [1, 1]} : vector<32x32xf32> to vector<32x16xf32>
    %cst_3 = arith.constant 0.000000e+00 : f32
    %23 = vector.broadcast %cst_3 : f32 to vector<1x16xf32>
    %24 = vector.extract_strided_slice %22 {offsets = [0, 0], sizes = [31, 16], strides = [1, 1]} : vector<32x16xf32> to vector<31x16xf32>
    %25 = tpu.concatenate %23, %24 in 0 : vector<1x16xf32>, vector<31x16xf32> -> vector<32x16xf32>
    %26 = tpu.iota {dimensions = array<i32: 0>} : vector<32x1xi32>
    %c8_i32 = arith.constant 8 : i32
    %c0_i32 = arith.constant 0 : i32
    %27 = arith.cmpi eq, %c8_i32, %c0_i32 : i32
    %c1_i32 = arith.constant 1 : i32
    %28 = arith.select %27, %c1_i32, %c8_i32 : i32
    %29 = vector.broadcast %28 : i32 to vector<32x1xi32>
    %30 = arith.remsi %26, %29 : vector<32x1xi32>
    %c0_i32_4 = arith.constant 0 : i32
    %31 = vector.broadcast %c0_i32_4 : i32 to vector<32x1xi32>
    %32 = arith.cmpi ne, %30, %31 : vector<32x1xi32>
    %c0_i32_5 = arith.constant 0 : i32
    %33 = vector.broadcast %c0_i32_5 : i32 to vector<32x1xi32>
    %34 = arith.cmpi slt, %30, %33 : vector<32x1xi32>
    %c0_i32_6 = arith.constant 0 : i32
    %35 = arith.cmpi slt, %28, %c0_i32_6 : i32
    %36 = vector.broadcast %35 : i1 to vector<32x1xi1>
    %37 = vector.broadcast %36 : vector<32x1xi1> to vector<32x1xi1>
    %38 = arith.xori %34, %37 : vector<32x1xi1>
    %39 = arith.andi %38, %32 : vector<32x1xi1>
    %40 = vector.broadcast %28 : i32 to vector<32x1xi32>
    %41 = arith.addi %30, %40 : vector<32x1xi32>
    %42 = arith.select %39, %41, %30 : vector<32x1xi1>, vector<32x1xi32>
    %c0_i32_7 = arith.constant 0 : i32
    %43 = vector.broadcast %c0_i32_7 : i32 to vector<32x1xi32>
    %44 = arith.cmpi eq, %42, %43 : vector<32x1xi32>
    %cst_8 = arith.constant 0.000000e+00 : f32
    %45 = vector.shape_cast %44 : vector<32x1xi1> to vector<32x1xi1>
    %46 = vector.broadcast %45 : vector<32x1xi1> to vector<32x16xi1>
    %47 = vector.broadcast %cst_8 : f32 to vector<32x16xf32>
    %48 = arith.select %46, %47, %25 : vector<32x16xi1>, vector<32x16xf32>
    %49 = arith.maximumf %22, %48 : vector<32x16xf32>
    %50 = arith.maximumf %21, %49 : vector<32x16xf32>
    %c0_9 = arith.constant 0 : index
    %c0_10 = arith.constant 0 : index
    %51 = vector.load %arg2[%c0_9, %c0_10] : memref<16x8xf32, #tpu.memory_space<vmem>>, vector<16x8xf32>
    %cst_11 = arith.constant dense<0.000000e+00> : vector<32x8xf32>
    %52 = tpu.matmul %50, %51, %cst_11 {dimension_numbers = #tpu.dot_dimension_numbers<[1], [0], [0], [1], [0, 0, 1, 1], [], []>, precision = #tpu.contract_precision<fp32>} : vector<32x16xf32>, vector<16x8xf32>, vector<32x8xf32> -> vector<32x8xf32>
    %c0_12 = arith.constant 0 : index
    %c0_13 = arith.constant 0 : index
    %53 = vector.load %arg3[%c0_12, %c0_13] : memref<32x8xf32, #tpu.memory_space<vmem>>, vector<32x8xf32>
    tpu.vector_store %arg3[%c0_12, %c0_13], %52 {strides = array<i32>} : memref<32x8xf32, #tpu.memory_space<vmem>>, vector<32x8xf32>,
    return
  }
  func.func @transform_0(%arg0: i32) -> (i32, i32) {
    %c0_i32 = arith.constant 0 : i32
    %c0_i32_0 = arith.constant 0 : i32
    return %arg0, %c0_i32 : i32, i32
  }
  func.func @transform_1(%arg0: i32) -> (i32, i32) {
    %c0_i32 = arith.constant 0 : i32
    %c0_i32_0 = arith.constant 0 : i32
    %c0_i32_1 = arith.constant 0 : i32
    return %c0_i32, %c0_i32_0 : i32, i32
  }
  func.func @transform_2(%arg0: i32) -> (i32, i32) {
    %c0_i32 = arith.constant 0 : i32
    %c0_i32_0 = arith.constant 0 : i32
    return %arg0, %c0_i32 : i32, i32
  }
}

</mosaic_0001>

<bundles_post_ra>
// kernel: maxpool_forward.1
= control target key start
LH: loop header
LB: loop body
LE: loop exit
PB: predicated region body
PF: predicated region fallthrough
CT: control target
= control target key end

     0   :  { %7 = vsyncpa [#allocation3], 0  ;;  %s1474_s0 = inlined_call_operand.vmem [shape: f32[64,32], index: 0, kind: input, shape index: {}]   ;;  %s1475_s1 = inlined_call_operand.vmem [shape: f32[16,8], index: 1, kind: input, shape index: {}]   ;;  %s1476_s2 = inlined_call_operand.hbm [shape: f32[64,8], index: 2, kind: output, shape index: {}]  }
   0x1   :  { %9 = vsyncpa [#allocation3 + $0x1], 0  ;;  %s1267_s9 = smov 0   ;;  %s1269_s10 = smov 0  }
   0x2   :  { %s1271_s11 = smov 0   ;;  %s1273_s12 = smov 0  }
   0x3 LB: > { %s1288_s13 = sadd.s32 4294967295, %s1243_s12   ;;  %s1029_s14 = sadd.s32 4294967294, %s1243_s12   ;;  %s1243_s12 = sphi %s1273_s12, %s1482_s12   ;;  %s1239_s11 = sphi %s1271_s11, %s1481_s11   ;;  %s1235_s10 = sphi %s1269_s10, %s1480_s10   ;;  %s1231_s9 = sphi %s1267_s9, %s1479_s9  }
   0x4   : > { %s1292_s15 = sadd.s32 1, %s1243_s12   ;;  %s69_s16 = sadd.s32 1, %s1239_s11 }
   0x5   : > { %s66_s17 = ssub.s32 %s1243_s12, %s1292_s15  ;;  %p79_p0 = scmp.ne.s32.totalorder %s1239_s11, %s1235_s10 }
   0x6   : > { %p67_p1 = scmp.eq.s32.totalorder %s66_s17, 0  ;;  %p80_p2 = scmp.eq.s32.totalorder %s1288_s13, 1 }
   0x7   : > { %p85_p3 = scmp.ne.s32.totalorder %s1235_s10, %s1231_s9  ;;  %p86_p4 = scmp.eq.s32.totalorder %s1029_s14, 1 }
   0x8   : > { %s1303_s18 = scalar_select %p67_p1, %s1239_s11, %s69_s16  }
   0x9   : > { %p1305_p5 = por %p80_p2, %p79_p0  ;;  %p1309_p6 = por %p86_p4, %p85_p3 }
   0xa   : > { %p1032_p7 = scmp.ge.s32.totalorder %s1243_s12, 1  ;;  %p116_p8 = scmp.lt.s32.totalorder %s1243_s12, 3 }
   0xc   : > { %p117_p9 = pnand %p1032_p7, %p116_p8 }
   0xd   : > { %s1034_s21 = sshll.u32 (!%p117_p9), %s1288_s13, 2  ;;  %s1245_s26 = smov (!%p117_p9), 1  }
   0xe   : > { %120 = sbr.rel (%p117_p9) target bundleno = 749 (0x2ed), region = 28  ;;  %p139_p10 = scmp.lt.s32.totalorder (!%p117_p9), %s1034_s21, 7 }
   0xf   : > { %s1246_s27 = smov (!%p117_p9), 127   ;;  %s1247_s28 = smov (!%p117_p9), 112  }
  0x10   : > { %s1248_s29 = smov (!%p117_p9), 16   ;;  %s135_s6 = sand.u32 (!%p117_p9), 1, %s1235_s10  }
  0x11   : > { %s1033_s7 = sshll.u32 (!%p117_p9), %s135_s6, 5  ;;  %s1041_s16 = sshll.u32 (!%p117_p9), %s1288_s13, 9 }
  0x12   : > { %s137_s8 = scalar_lea.vmem (!%p117_p9), [#allocation2], %s1033_s7  ;;  %s1434_s13 = scalar_lea.sflag (!%p117_p9), [#allocation3], %s135_s6 }
  0x13   : > { %s1484_s21 = smov (!%p139_p10, %s1034_s21), 7  ;;  %v149_v4 = vlaneseq  ;;  %vm167_vm0 = vcmask 7168   ;;  %vm191_vm1 = vcmask 252928   ;;  %vm215_vm4 = vcmask 1040384   ;;  %v346_v62 = vld [vmem:[%s1475_s1 + $0x8] sm:$0xff]  ;;  %s967_s14 = sshll.u32 %s137_s8, 4  ;;  %s1428_s14 = int_to_ptr.vmem [resolvable:$true] %s967_s14 }
  0x14   : > { %s1035_s22 = sshll.u32 %s1484_s21, 3  ;;  %v1358_v63 = vand.u32 4294901760, %v346_v62  ;;  %vm347_vm9 = vcmask 130048   ;;  %vm948_vm10 = vcmask 64512   ;;  %s1183_s23 = scalar_lea.vmem %s1428_s14, 512 }
  0x15   : > { %s142_s25 = scalar_lea.vmem %s1474_s0, %s1035_s22  ;;  %v150_v5 = vand.u32 127, %v149_v4  ;;  %v237_v45 = vshrl.u32 %v149_v4, 7  ;;  %s1426_s22 = scalar_lea.hbm %s1476_s2, %s1041_s16 }
  0x16   : > { %v146_v0 = vld [vmem:[%s142_s25 + $0x8] sm:$0xff]  ;;  %v145_v1 = vld [vmem:[%s142_s25] sm:$0xff]  ;;  %v147_v2 = vld [vmem:[%s142_s25 + $0x10] sm:$0xff]  ;;  %1078 = vmatprep.subr.mxu0 %v1358_v63  ;;  %p1184_p11 = scmp.ne.s32.totalorder %s1428_s14, %s1183_s23  ;;  %s1249_s24 = smov [#allocation2]  }
  0x17   : > { %157 = vrot.lane.b32.xlu1 %v146_v0, %s1245_s26  ;;  %155 = vrot.lane.b32.xlu0 %v145_v1, %s1245_s26  ;;  %v148_v3 = vld [vmem:[%s142_s25 + $0x18] sm:$0xff]  ;;  %vm172_vm2 = vcmp.eq.s32.totalorder %v150_v5, 16  ;;  %vm196_vm3 = vcmp.eq.s32.totalorder %v150_v5, 15  ;;  %v238_v46 = vadd.s32 8, %v237_v45  ;;  %v245_v47 = vand.u32 7, %v237_v45  ;;  %s1187_s25 = sshll.u32 %s1249_s24, 4  ;;  %s1188_s25 = int_to_ptr.vmem [resolvable:$false] %s1187_s25 }
  0x18   : > { %v239_v49 = vadd.s32 16, %v237_v45  ;;  %v240_v51 = vadd.s32 24, %v237_v45  ;;  %1079 = vmatpush3.msra.mxu0 %v1358_v63  ;;  %p1185_p12 = pnand %p1184_p11, %p1305_p5  ;;  %p1190_p0 = scmp.lt.s32.totalorder %s1428_s14, %s1188_s25 }
  0x19   : > { %v252_v48 = vand.u32 7, %v238_v46  ;;  %vm289_vm5 = vcmp.eq.s32.totalorder %v245_v47, 0 }
  0x1a   : > { %v259_v50 = vand.u32 7, %v239_v49  ;;  %v266_v57 = vand.u32 7, %v240_v51  ;;  %p1186_p13 = pneg %p1185_p12 }
  0x1b   : > { %181 = vrot.lane.b32.xlu1 %v146_v0, %s1246_s27  ;;  %179 = vrot.lane.b32.xlu0 %v145_v1, %s1246_s27  ;;  %vm290_vm6 = vcmp.eq.s32.totalorder %v252_v48, 0 }
  0x1c   : > { %vm291_vm7 = vcmp.eq.s32.totalorder %v259_v50, 0  ;;  %vm292_vm8 = vcmp.eq.s32.totalorder %v266_v57, 0 }
  0x1f   : > { %183 = vrot.lane.b32.xlu1 %v147_v2, %s1246_s27  ;;  %159 = vrot.lane.b32.xlu0 %v147_v2, %s1245_s26 }
  0x23   : > { %185 = vrot.lane.b32.xlu1 %v148_v3, %s1246_s27  ;;  %161 = vrot.lane.b32.xlu0 %v148_v3, %s1245_s26  ;;  %s1189_s26 = scalar_lea.vmem %s1188_s25, 1024 }
  0x24   : > { %p1191_p1 = scmp.lt.s32.totalorder %s1189_s26, %s1183_s23 }
  0x26   : > { %p1192_p2 = por %p1191_p1, %p1190_p0 }
  0x28   : > { %p1193_p3 = pnand %p1192_p2, %p1186_p13 }
  0x89   : > { %v158_v6 = vpop.permute.xlu1 %157  ;;  %v156_v7 = vpop.permute.xlu0 %155 }
  0x8a   : > { %v169_v8 = vsel %vm167_vm0, 0.0, %v158_v6  ;;  %v168_v9 = vsel %vm167_vm0, 0.0, %v156_v7 }
  0x8b   : > { %v176_v14 = vsel %vm172_vm2, 0.0, %v169_v8  ;;  %v175_v15 = vsel %vm172_vm2, 0.0, %v168_v9 }
  0x8d   : > { %v182_v10 = vpop.permute.xlu1 %181  ;;  %v180_v11 = vpop.permute.xlu0 %179 }
  0x8e   : > { %v193_v12 = vsel %vm191_vm1, %v182_v10, 0.0  ;;  %v192_v13 = vsel %vm191_vm1, %v180_v11, 0.0 }
  0x8f   : > { %v200_v16 = vsel %vm196_vm3, 0.0, %v193_v12  ;;  %v199_v17 = vsel %vm196_vm3, 0.0, %v192_v13 }
  0x90   : > { %v204_v18 = vmax.f32 %v176_v14, %v200_v16  ;;  %v203_v19 = vmax.f32 %v175_v15, %v199_v17 }
  0x91   : > { %v184_v20 = vpop.permute.xlu1 %183  ;;  %v160_v21 = vpop.permute.xlu0 %159 }
  0x92   : > { %v1327_v22 = vmax.f32 %v146_v0, %v204_v18  ;;  %v1329_v23 = vmax.f32 %v145_v1, %v203_v19  ;;  %v194_v24 = vsel %vm191_vm1, %v184_v20, 0.0  ;;  %v170_v25 = vsel %vm167_vm0, 0.0, %v160_v21  ;;  %v345_v0 = vld [vmem:[%s1475_s1] sm:$0xff] }
  0x93   : > { %v201_v26 = vsel %vm196_vm3, 0.0, %v194_v24  ;;  %v177_v27 = vsel %vm172_vm2, 0.0, %v170_v25  ;;  %v1364_v1 = vsub.f32 %v346_v62, %v1358_v63 }
  0x94   : > { %v205_v28 = vmax.f32 %v177_v27, %v201_v26  ;;  %v216_v29 = vrot.slane %v1329_v23, 7  ;;  %v217_v30 = vrot.slane %v1327_v22, 7 }
  0x95   : > { %v186_v31 = vpop.permute.xlu1 %185  ;;  %v162_v32 = vpop.permute.xlu0 %161 }
  0x96   : > { %v1337_v33 = vmax.f32 %v147_v2, %v205_v28  ;;  %v195_v34 = vsel %vm191_vm1, %v186_v31, 0.0  ;;  %v171_v35 = vsel %vm167_vm0, 0.0, %v162_v32  ;;  %223 = vrot.lane.b32.xlu0 %v216_v29, %s1247_s28  ;;  %v218_v36 = vsel %vm215_vm4, %v216_v29, %v217_v30 }
  0x97   : > { %v202_v37 = vsel %vm196_vm3, 0.0, %v195_v34  ;;  %v178_v38 = vsel %vm172_vm2, 0.0, %v171_v35  ;;  %225 = vrot.lane.b32.xlu1 %v218_v36, %s1247_s28  ;;  %v1366_v2 = vand.u32 4294901760, %v345_v0 }
  0x98   : > { %v206_v39 = vmax.f32 %v178_v38, %v202_v37  ;;  %v219_v40 = vrot.slane %v1337_v33, 7 }
  0x99   : > { %v1374_v4 = vsub.f32 %v345_v0, %v1366_v2  ;;  %1080 = vmatprep.subr.mxu0 %v1366_v2 }
  0x9a   : > { %v1347_v41 = vmax.f32 %v148_v3, %v206_v39  ;;  %v220_v42 = vsel %vm215_vm4, %v217_v30, %v219_v40  ;;  %v1371_v3 = vand.u32 4294901760, %v1364_v1  ;;  %1081 = vmatpush3.msra.mxu0 %v1366_v2 }
  0x9b   : > { %227 = vrot.lane.b32.xlu0 %v220_v42, %s1247_s28  ;;  %v1381_v6 = vand.u32 4294901760, %v1374_v4  ;;  %1098 = vmatprep.subr.mxu0 %v1364_v1 }
  0x9c   : > { %v221_v43 = vrot.slane %v1347_v41, 7  ;;  %v499_v5 = vsub.f32 %v1364_v1, %v1371_v3 }
  0x9d   : > { %v506_v8 = vsub.f32 %v1374_v4, %v1381_v6 }
  0x9e   : > { %v222_v44 = vsel %vm215_vm4, %v219_v40, %v221_v43  ;;  %v500_v7 = vand.u32 4294901760, %v499_v5 }
  0x9f   : > { %229 = vrot.lane.b32.xlu1 %v222_v44, %s1247_s28  ;;  %v507_v9 = vand.u32 4294901760, %v506_v8 }
  0xa0   : > { %1088 = vmatprep.subr.mxu1 %v500_v7 }
  0xa1   : > { %1089 = vmatpush3.msra.mxu1 %v500_v7 }
  0xa2   : > { %1090 = vmatprep.subr.mxu1 %v507_v9 }
  0xa3   : > { %1091 = vmatpush3.msra.mxu1 %v507_v9 }
  0xa4   : > { %1108 = vmatprep.subr.mxu1 %v1358_v63 }
 0x108   : > { %v224_v52 = vpop.permute.xlu0 %223 }
 0x109   : > { %v235_v53 = vsel %vm215_vm4, 0.0, %v224_v52  ;;  %v226_v54 = vpop.permute.xlu1 %225 }
 0x10a   : > { %v301_v55 = vsel %vm289_vm5, 0.0, %v235_v53  ;;  %v302_v56 = vsel %vm290_vm6, 0.0, %v226_v54 }
 0x10b   : > { %311 = vrot.lane.b32.xlu1 %v302_v56, %s1248_s29  ;;  %309 = vrot.lane.b32.xlu0 %v301_v55, %s1248_s29 }
 0x10d   : > { %v228_v58 = vpop.permute.xlu0 %227 }
 0x10e   : > { %v303_v59 = vsel %vm291_vm7, 0.0, %v228_v58 }
 0x10f   : > { %313 = vrot.lane.b32.xlu0 %v303_v59, %s1248_s29 }
 0x111   : > { %v230_v60 = vpop.permute.xlu1 %229 }
 0x112   : > { %v304_v61 = vsel %vm292_vm8, 0.0, %v230_v60 }
 0x113   : > { %315 = vrot.lane.b32.xlu1 %v304_v61, %s1248_s29 }
 0x17d   : > { %v312_v10 = vpop.permute.xlu1 %311  ;;  %v310_v11 = vpop.permute.xlu0 %309 }
 0x17e   : > { %v322_v12 = vmax.f32 %v1327_v22, %v312_v10  ;;  %v321_v13 = vmax.f32 %v1329_v23, %v310_v11 }
 0x180   : > { %331 = vrot.lane.b32.xlu1 %v322_v12, %s1247_s28  ;;  %329 = vrot.lane.b32.xlu0 %v321_v13, %s1247_s28 }
 0x181   : > { %v314_v14 = vpop.permute.xlu0 %313 }
 0x182   : > { %v323_v15 = vmax.f32 %v1337_v33, %v314_v14 }
 0x184   : > { %333 = vrot.lane.b32.xlu0 %v323_v15, %s1247_s28 }
 0x185   : > { %v316_v16 = vpop.permute.xlu1 %315 }
 0x186   : > { %v324_v17 = vmax.f32 %v1347_v41, %v316_v16 }
 0x188   : > { %335 = vrot.lane.b32.xlu1 %v324_v17, %s1247_s28 }
 0x1f2   : > { %v332_v18 = vpop.permute.xlu1 %331  ;;  %v330_v19 = vpop.permute.xlu0 %329 }
 0x1f3   : > { %v342_v20 = vmax.f32 %v1327_v22, %v332_v18  ;;  %v341_v21 = vmax.f32 %v1329_v23, %v330_v19 }
 0x1f5   : > { %v352_v24 = vsel %vm347_vm9, %v342_v20, 0  ;;  %v349_v25 = vsel %vm347_vm9, %v341_v21, 0 }
 0x1f6   : > { %v437_v26 = vand.u32 4294901760, %v352_v24  ;;  %v427_v27 = vand.u32 4294901760, %v349_v25  ;;  %v334_v28 = vpop.permute.xlu0 %333 }
 0x1f7   : > { %v343_v29 = vmax.f32 %v1337_v33, %v334_v28 }
 0x1f8   : > { %v438_v30 = vsub.f32 %v352_v24, %v437_v26  ;;  %v428_v31 = vsub.f32 %v349_v25, %v427_v27  ;;  %1092 = vmatprep.mubr.f32.mxu1 %v427_v27 }
 0x1f9   : > { %v355_v32 = vsel %vm347_vm9, %v343_v29, 0  ;;  %1093 = vmatmul.mubr.f32.vlgmr.msra.gmra.mxu1 %v437_v26 }
 0x1fa   : > { %v447_v34 = vand.u32 4294901760, %v355_v32  ;;  %v336_v35 = vpop.permute.xlu1 %335  ;;  %v429_v22 = vand.u32 4294901760, %v428_v31  ;;  %v439_v36 = vand.u32 4294901760, %v438_v30  ;;  %1109 = vmatpush3.msra.mxu1 %v1358_v63 }
 0x1fb   : > { %v344_v23 = vmax.f32 %v1347_v41, %v336_v35  ;;  %1110 = vmatprep.subr.mxu1 %v1366_v2 }
 0x1fc   : > { %v448_v37 = vsub.f32 %v355_v32, %v447_v34  ;;  %1095 = vmatprep.mubr.f32.mxu1 %v447_v34  ;;  %v430_v38 = vsub.f32 %v428_v31, %v429_v22  ;;  %v440_v33 = vsub.f32 %v438_v30, %v439_v36  ;;  %1111 = vmatpush3.msra.mxu1 %v1366_v2 }
 0x1fd   : > { %v358_v39 = vsel %vm347_vm9, %v344_v23, 0  ;;  %1128 = vmatprep.subr.mxu1 %v1358_v63 }
 0x1fe   : > { %v457_v40 = vand.u32 4294901760, %v358_v39  ;;  %v431_v42 = vand.u32 4294901760, %v430_v38  ;;  %v441_v43 = vand.u32 4294901760, %v440_v33  ;;  %v449_v44 = vand.u32 4294901760, %v448_v37 }
 0x200   : > { %v458_v45 = vsub.f32 %v358_v39, %v457_v40  ;;  %1082 = vmatprep.mubr.f32.mxu0 %v431_v42  ;;  %1096 = vmatmul.mubr.f32.gmra.mxu1 %v457_v40  ;;  %v450_v41 = vsub.f32 %v448_v37, %v449_v44 }
 0x201   : > { %1083 = vmatmul.mubr.f32.vlgmr.msra.gmra.mxu0 %v441_v43  ;;  %1112 = vmatprep.mubr.f32.mxu1 %v429_v22 }
 0x202   : > { %v451_v46 = vand.u32 4294901760, %v450_v41  ;;  %1099 = vmatpush3.msra.mxu0 %v1364_v1  ;;  %v459_v47 = vand.u32 4294901760, %v458_v45 }
 0x203   : > { %1100 = vmatprep.subr.mxu0 %v1374_v4 }
 0x204   : > { %1085 = vmatprep.mubr.f32.mxu0 %v451_v46  ;;  %1113 = vmatmul.mubr.f32.vlgmr.msra.gmra.mxu1 %v439_v36  ;;  %v460_v48 = vsub.f32 %v458_v45, %v459_v47 }
 0x205   : > { %1115 = vmatprep.mubr.f32.mxu1 %v449_v44  ;;  %1101 = vmatpush3.msra.mxu0 %v1374_v4 }
 0x206   : > { %v461_v49 = vand.u32 4294901760, %v460_v48  ;;  %1129 = vmatpush3.msra.mxu1 %v1358_v63  ;;  %1118 = vmatprep.subr.mxu0 %v1371_v3 }
 0x207   : > { %1130 = vmatprep.subr.mxu1 %v1366_v2 }
 0x208   : > { %1086 = vmatmul.mubr.f32.gmra.mxu0 %v461_v49  ;;  %1116 = vmatmul.mubr.f32.gmra.mxu1 %v459_v47 }
 0x209   : > { %1102 = vmatprep.mubr.f32.mxu0 %v428_v31  ;;  %1132 = vmatprep.mubr.f32.mxu1 %v427_v27 }
 0x20a   : > { %1131 = vmatpush3.msra.mxu1 %v1366_v2 }
 0x20c   : > { %1103 = vmatmul.mubr.f32.vlgmr.msra.gmra.mxu0 %v438_v30  ;;  %1133 = vmatmul.mubr.f32.vlgmr.msra.gmra.mxu1 %v437_v26 }
 0x20d   : > { %1119 = vmatpush3.msra.mxu0 %v1371_v3  ;;  %1105 = vmatprep.mubr.f32.mxu0 %v448_v37 }
 0x20e   : > { %1135 = vmatprep.mubr.f32.mxu1 %v447_v34  ;;  %1120 = vmatprep.subr.mxu0 %v1381_v6 }
 0x20f   : > { %1121 = vmatpush3.msra.mxu0 %v1381_v6 }
 0x210   : > { %1106 = vmatmul.mubr.f32.gmra.mxu0 %v458_v45  ;;  %1136 = vmatmul.mubr.f32.gmra.mxu1 %v457_v40 }
 0x211   : > { %1122 = vmatprep.mubr.f32.mxu0 %v427_v27 }
 0x214   : > { %1123 = vmatmul.mubr.f32.vlgmr.msra.gmra.mxu0 %v437_v26 }
 0x215   : > { %1125 = vmatprep.mubr.f32.mxu0 %v447_v34 }
 0x218   : > { %1126 = vmatmul.mubr.f32.gmra.mxu0 %v457_v40 }
 0x2b9   : > { %v1094_v50 = vpop.f32.mrf.mxu1 }
 0x2bb   : > { %v544_v51 = vpop.f32.mrf.mxu1 }
 0x2c0   : > { %v1097_v52 = vpop.f32.mrf.mxu1 }
 0x2c1   : > { %v1084_v53 = vpop.f32.mrf.mxu0 }
 0x2c2   : > { %v556_v54 = vpop.f32.mrf.mxu1  ;;  %v551_v63 = vadd.f32 %v1094_v50, %v1084_v53 }
 0x2c3   : > { %v433_v56 = vpop.f32.mrf.mxu0 }
 0x2c4   : > { %v1114_v55 = vpop.f32.mrf.mxu1  ;;  %v545_v1 = vadd.f32 %v544_v51, %v433_v56 }
 0x2c6   : > { %v734_v57 = vpop.f32.mrf.mxu1 }
 0x2c8   : > { %v1087_v58 = vpop.f32.mrf.mxu0  ;;  %v1117_v59 = vpop.f32.mrf.mxu1 }
 0x2c9   : > { %v563_v5 = vadd.f32 %v1097_v52, %v1087_v58 }
 0x2ca   : > { %v453_v60 = vpop.f32.mrf.mxu0  ;;  %v750_v61 = vpop.f32.mrf.mxu1 }
 0x2cb   : > { %v557_v8 = vadd.f32 %v556_v54, %v453_v60 }
 0x2cc   : > { %v1104_v62 = vpop.f32.mrf.mxu0  ;;  %v1134_v3 = vpop.f32.mrf.mxu1 }
 0x2cd   : > { %v646_v2 = vadd.f32 %v1104_v62, %v551_v63 }
 0x2ce   : > { %v638_v0 = vpop.f32.mrf.mxu0  ;;  %v926_v11 = vpop.f32.mrf.mxu1 }
 0x2cf   : > { %v639_v6 = vadd.f32 %v638_v0, %v545_v1  ;;  %v743_v10 = vadd.f32 %v1114_v55, %v646_v2 }
 0x2d0   : > { %v1107_v4 = vpop.f32.mrf.mxu0  ;;  %v1137_v20 = vpop.f32.mrf.mxu1 }
 0x2d1   : > { %v660_v9 = vadd.f32 %v1107_v4, %v563_v5  ;;  %v735_v15 = vadd.f32 %v734_v57, %v639_v6 }
 0x2d2   : > { %v652_v7 = vpop.f32.mrf.mxu0  ;;  %v938_v30 = vpop.f32.mrf.mxu1 }
 0x2d3   : > { %v653_v13 = vadd.f32 %v652_v7, %v557_v8  ;;  %v759_v19 = vadd.f32 %v1117_v59, %v660_v9 }
 0x2d4   : > { %v1124_v12 = vpop.f32.mrf.mxu0 }
 0x2d5   : > { %v842_v14 = vadd.f32 %v1124_v12, %v743_v10  ;;  %v751_v26 = vadd.f32 %v750_v61, %v653_v13 }
 0x2d6   : > { %v835_v16 = vpop.f32.mrf.mxu0 }
 0x2d7   : > { %v933_v17 = vadd.f32 %v1134_v3, %v842_v14  ;;  %v836_v18 = vadd.f32 %v835_v16, %v735_v15 }
 0x2d8   : > { %v1127_v21 = vpop.f32.mrf.mxu0 }
 0x2d9   : > { %950 = vst.msk [vmem:[%s137_s8 + $0x8] sm:$0xff] %vm948_vm10, %v933_v17  ;;  %v927_v24 = vadd.f32 %v926_v11, %v836_v18  ;;  %v854_v25 = vadd.f32 %v1127_v21, %v759_v19 }
 0x2da   : > { %v847_v27 = vpop.f32.mrf.mxu0 }
 0x2db   : > { %949 = vst.msk [vmem:[%s137_s8] sm:$0xff] %vm948_vm10, %v927_v24  ;;  %v945_v28 = vadd.f32 %v1137_v20, %v854_v25  ;;  %v848_v29 = vadd.f32 %v847_v27, %v751_v26 }
 0x2dd   : > { %952 = vst.msk [vmem:[%s137_s8 + $0x18] sm:$0xff] %vm948_vm10, %v945_v28  ;;  %v939_v31 = vadd.f32 %v938_v30, %v848_v29 }
 0x2df   : > { %951 = vst.msk [vmem:[%s137_s8 + $0x10] sm:$0xff] %vm948_vm10, %v939_v31 }
 0x2e0   : > { %1196 = shalt.err (!%p1193_p3)
}
 0x2e1   : > { %s1197_s27 = scalar_lea.hbm %s1426_s22, 512  ;;  %s1201_s30 = scalar_lea.hbm %s1476_s2, 1024 }
 0x2e2   : > { %p1198_p4 = scmp.ne.s32.totalorder %s1426_s22, %s1197_s27  ;;  %p1202_p9 = scmp.lt.s32.totalorder %s1426_s22, %s1476_s2 }
 0x2e3   : > { %p1203_p10 = scmp.lt.s32.totalorder %s1201_s30, %s1197_s27 }
 0x2e4   : > { %p1199_p7 = pnand %p1198_p4, %p1305_p5 }
 0x2e5   : > { %p1204_p11 = por %p1203_p10, %p1202_p9 }
 0x2e6   : > { %p1200_p8 = pneg %p1199_p7 }
 0x2e8   : > { %p1205_p12 = pnand %p1204_p11, %p1200_p8 }
 0x2ea   : > { %1208 = shalt.err (!%p1205_p12)
}
 0x2eb   : > { %s1250_s5 = smov 128   ;;  %s1251_s6 = smov 8  }
 0x2ec   : > { %1138 = dma.vmem_to_hbm [thread:$0]  (%p1305_p5), %s1428_s14, 512, %s1426_s22, %s1434_s13, %s1250_s5, %s1250_s5, %s1251_s6  }
 0x2ed PF: > { %p1144_p13 = scmp.ge.s32.totalorder %s1243_s12, 2  ;;  %s982_s7 = sand.u32 1, %s1231_s9  }
 0x2ee   : > { %s983_s8 = scalar_lea.sflag [#allocation3], %s982_s7 }
 0x2ef   : > { %p1141_p0 = pnand %p1144_p13, %p1309_p6 }
 0x2f1   : > { %p1142_p1 = pneg %p1141_p0 }
 0x2f3   : > { %1226 = dma.done.wait (%p1142_p1), %s983_s8, 512  }
 0x2f4   : > { %1228 = vsyncadd (%p1142_p1), %s983_s8, 4294966784  ;;  %p12_p2 = scmp.ge.s32.totalorder %s1292_s15, 4   ;;  %s1479_s9 = smov %s1235_s10 }
 0x2f5   : > { %s1480_s10 = smov %s1239_s11  ;;  %s1481_s11 = smov %s1303_s18 }
 0x2f6   : > { %s1482_s12 = smov %s1292_s15  ;;  %14 = sbr.rel (!%p12_p2) target bundleno = 3 (0x3), region = 63 }
 0x2fb   :  { %988 = vsyncpa [#allocation3], 1 }
 0x2fc   :  { %990 = vsyncpa [#allocation3 + $0x1], 1 }

</bundles_post_ra>
